<compile_context>
chip_gen: v5e
topology: v5e:2x2
jax: 0.10.0
libtpu: 0.0.40
codegen_flags: <defaults>
</compile_context>

<pallas_src>
import functools
import math

import jax
import jax.numpy as jnp
from jax.experimental import pallas as pl
from jax.experimental.pallas import tpu as pltpu


# ---------------------------------------------------------------------------
# Pallas kernel: feedforward -> Q/K/V -> masked attention -> LayerNorm -> out
# ---------------------------------------------------------------------------
def attn_head_kernel(z_ref, m_ref,
                     wff_ref, bff_ref,
                     wq_ref, bq_ref, wk_ref, bk_ref, wv_ref, bv_ref,
                     lng_ref, lnb_ref, wo_ref, bo_ref,
                     out_ref, *, scale, eps):
    TB, S, H2 = z_ref.shape
    F = wff_ref.shape[1]
    L = wo_ref.shape[1]

    # FeedForward: one (TB*S, 2H) @ (2H, F) matmul for the whole batch tile (bf16 MXU,
    # f32 accumulation), tanh in f32.
    z2 = z_ref[...].reshape(TB * S, H2).astype(jnp.bfloat16)
    h = jnp.tanh(
        jnp.dot(z2, wff_ref[...], preferred_element_type=jnp.float32) + bff_ref[...])
    hb = h.astype(jnp.bfloat16)

    q = jnp.dot(hb, wq_ref[...], preferred_element_type=jnp.float32) + bq_ref[...]
    k = jnp.dot(hb, wk_ref[...], preferred_element_type=jnp.float32) + bk_ref[...]
    v = jnp.dot(hb, wv_ref[...], preferred_element_type=jnp.float32) + bv_ref[...]

    qb = q.reshape(TB, S, F).astype(jnp.bfloat16)
    kb = k.reshape(TB, S, F).astype(jnp.bfloat16)
    vb = v.reshape(TB, S, F).astype(jnp.bfloat16)

    # scores = Q @ K^T / sqrt(F), masked_fill(mask == 0, -1e10), softmax over keys.
    scores = jnp.einsum('bqf,bkf->bqk', qb, kb,
                        preferred_element_type=jnp.float32) * scale
    scores = jnp.where(m_ref[...] > 0, scores, jnp.float32(-1e10))   # (TB,1,S) broadcast
    scores = scores - jnp.max(scores, axis=-1, keepdims=True)
    e = jnp.exp(scores)
    p = e * pl.reciprocal(jnp.sum(e, axis=-1, keepdims=True), approx=True)

    ctx = jnp.einsum('bqk,bkf->bqf', p.astype(jnp.bfloat16), vb,
                     preferred_element_type=jnp.float32)              # (TB, S, F)

    # LayerNorm over F (f32).
    mu = jnp.mean(ctx, axis=-1, keepdims=True)
    var = jnp.mean(jnp.square(ctx - mu), axis=-1, keepdims=True)
    y = (ctx - mu) * jax.lax.rsqrt(var + eps) * lng_ref[...] + lnb_ref[...]

    # Output projection for the whole batch tile; sublane-dense (TB, S, L) store.
    logits = (jnp.dot(y.reshape(TB * S, F).astype(jnp.bfloat16), wo_ref[...],
                      preferred_element_type=jnp.float32) + bo_ref[...])
    out_ref[...] = logits.reshape(TB, S, L)


def _pick_batch_tile(B):
    # Batch several sequences per grid step to amortize ~0.35us/step pipeline overhead,
    # but keep >= 2 grid steps when possible so v7x's two TensorCores both get work on
    # the "parallel" axis.
    for cand in (16, 8, 4, 2):
        if B % cand == 0 and B // cand >= 2:
            return cand
    return 1


def self_attention_head_fwd(z, mask, params, *, batch_tile=None):
    """z: (B, S, 2H) f32 encoder output; mask: (B, S). Returns (B, S, L) f32 logits."""
    B, S, H2 = z.shape
    F = params["w_ff"].shape[1]
    L = params["w_out"].shape[1]
    tb = batch_tile or _pick_batch_tile(B)
    assert B % tb == 0

    mask3 = mask.reshape(B, 1, S).astype(jnp.float32)
    scale = 1.0 / math.sqrt(F)
    kernel = functools.partial(attn_head_kernel, scale=scale, eps=1e-5)

    weights = (params["w_ff"], params["b_ff"],
               params["w_q"], params["b_q"],
               params["w_k"], params["b_k"],
               params["w_v"], params["b_v"],
               params["ln_g"], params["ln_b"],
               params["w_out"], params["b_out"])

    def full(a):
        return pl.BlockSpec(a.shape, lambda b, _nd=a.ndim: (0,) * _nd)

    flops = 2 * B * S * (H2 * F + 3 * F * F + 2 * S * F + F * L)
    bytes_accessed = int(B * S * H2 * 4 + B * S * 4 + B * S * L * 4
                         + sum(int(w.size) * w.dtype.itemsize for w in weights))
    cost = pl.CostEstimate(flops=flops,
                           transcendentals=B * S * (F + S),
                           bytes_accessed=bytes_accessed)

    return pl.pallas_call(
        kernel,
        out_shape=jax.ShapeDtypeStruct((B, S, L), jnp.float32),
        grid=(B // tb,),
        in_specs=[
            pl.BlockSpec((tb, S, H2), lambda b: (b, 0, 0)),   # encoder output tile
            pl.BlockSpec((tb, 1, S), lambda b: (b, 0, 0)),    # key mask tile
        ] + [full(w) for w in weights],
        out_specs=pl.BlockSpec((tb, S, L), lambda b: (b, 0, 0)),
        compiler_params=pltpu.CompilerParams(dimension_semantics=("parallel",)),
        cost_estimate=cost,
    )(z, mask3, *weights)


# ---------------------------------------------------------------------------
# JAX glue: masked bi-LSTM encoders (sequential recurrence, kept outside Pallas)
# ---------------------------------------------------------------------------
def _masked_lstm_direction(x, mask, w_ih, w_hh, b, reverse):
    """Packed-sequence emulation: freeze (h,c) on padded steps, zero padded outputs."""
    N, T, _ = x.shape
    H = w_hh.shape[1]
    xs = jnp.swapaxes(x, 0, 1)                      # (T, N, I)
    ms = jnp.swapaxes(mask, 0, 1)[..., None]        # (T, N, 1)
    if reverse:
        xs = xs[::-1]
        ms = ms[::-1]

    def step(carry, inp):
        h, c = carry
        x_t, m_t = inp
        gates = x_t @ w_ih.T + h @ w_hh.T + b
        i, f, g, o = jnp.split(gates, 4, axis=-1)
        i = jax.nn.sigmoid(i)
        f = jax.nn.sigmoid(f)
        g = jnp.tanh(g)
        o = jax.nn.sigmoid(o)
        c_new = f * c + i * g
        h_new = o * jnp.tanh(c_new)
        c = jnp.where(m_t > 0, c_new, c)
        h = jnp.where(m_t > 0, h_new, h)
        return (h, c), h * m_t

    init = (jnp.zeros((N, H), x.dtype), jnp.zeros((N, H), x.dtype))
    (h_last, _), ys = jax.lax.scan(step, init, (xs, ms))
    if reverse:
        ys = ys[::-1]
    return jnp.swapaxes(ys, 0, 1), h_last


def _bilstm_layer(x, mask, p_fwd, p_bwd):
    y_f, h_f = _masked_lstm_direction(x, mask, *p_fwd, reverse=False)
    y_b, h_b = _masked_lstm_direction(x, mask, *p_bwd, reverse=True)
    return jnp.concatenate([y_f, y_b], -1), jnp.concatenate([h_f, h_b], -1)


def _char_encode(chars, params):
    B, S, C = chars.shape
    flat = chars.reshape(B * S, C)
    cmask = (flat != 0).astype(jnp.float32)
    ce = jnp.take(params["char_emb"], flat, axis=0)           # (B*S, C, E)
    _, h = _bilstm_layer(ce, cmask, params["char_lstm_fwd"], params["char_lstm_bwd"])
    return h.reshape(B, S, -1)                                # (B, S, 2*chars_hidden)


def _seq_encode(feat, mask, params):
    y1, _ = _bilstm_layer(feat, mask, params["enc_l0_fwd"], params["enc_l0_bwd"])
    y2, _ = _bilstm_layer(y1, mask, params["enc_l1_fwd"], params["enc_l1_bwd"])
    return y2                                                 # (B, S, 2*hidden)


def model_forward(words, chars, cases, pos, params):
    mask = (words != 0).astype(jnp.float32)                   # (B, S)
    we = jnp.take(params["word_emb"], words, axis=0)
    ce = jnp.take(params["case_emb"], cases, axis=0)
    pe = jnp.take(params["pos_emb"], pos, axis=0)
    ch = _char_encode(chars, params)
    feat = jnp.concatenate([we, ch, ce, pe], axis=-1)         # same order as reference
    z = _seq_encode(feat, mask, params)                       # (B, S, 2H)
    # dropout: eval mode -> identity
    return self_attention_head_fwd(z, mask, params)


# ---------------------------------------------------------------------------
# Parameter init
# ---------------------------------------------------------------------------
def init_params(key, *, word_vocab, char_vocab, case_vocab, pos_vocab, ner_vocab,
                words_emb, dims):
    H = dims["hidden"]
    F = dims["feedforward"]
    CE = dims["char_emb_size"]
    CH = dims["chars_hidden"]
    total_emb = words_emb + 2 * CH + dims["case_emb_size"] + dims["pos_emb_size"]

    keys = iter(jax.random.split(key, 40))

    def emb(vocab, d):
        return 0.1 * jax.random.normal(next(keys), (vocab, d), jnp.float32)

    def lstm_dir(in_size, hidden):
        s = 1.0 / math.sqrt(hidden)
        u = lambda shape: jax.random.uniform(next(keys), shape, jnp.float32, -s, s)
        return (u((4 * hidden, in_size)), u((4 * hidden, hidden)), u((4 * hidden,)))

    def linear(fan_in, fan_out, w_dtype=jnp.float32):
        s = 1.0 / math.sqrt(fan_in)
        u = lambda shape: jax.random.uniform(next(keys), shape, jnp.float32, -s, s)
        return u((fan_in, fan_out)).astype(w_dtype), u((1, fan_out))

    w_ff, b_ff = linear(2 * H, F, jnp.bfloat16)
    w_q, b_q = linear(F, F, jnp.bfloat16)
    w_k, b_k = linear(F, F, jnp.bfloat16)
    w_v, b_v = linear(F, F, jnp.bfloat16)
    w_out, b_out = linear(F, ner_vocab, jnp.bfloat16)

    return {
        "word_emb": emb(word_vocab, words_emb),
        "char_emb": emb(char_vocab, CE),
        "case_emb": emb(case_vocab, dims["case_emb_size"]),
        "pos_emb": emb(pos_vocab, dims["pos_emb_size"]),
        "char_lstm_fwd": lstm_dir(CE, CH),
        "char_lstm_bwd": lstm_dir(CE, CH),
        "enc_l0_fwd": lstm_dir(total_emb, H),
        "enc_l0_bwd": lstm_dir(total_emb, H),
        "enc_l1_fwd": lstm_dir(2 * H, H),
        "enc_l1_bwd": lstm_dir(2 * H, H),
        "w_ff": w_ff, "b_ff": b_ff,
        "w_q": w_q, "b_q": b_q,
        "w_k": w_k, "b_k": b_k,
        "w_v": w_v, "b_v": b_v,
        "ln_g": jnp.ones((1, F), jnp.float32),
        "ln_b": jnp.zeros((1, F), jnp.float32),
        "w_out": w_out, "b_out": b_out,
    }


if __name__ == "__main__":
    # Small TPU-friendly dims (module accepts a dims override):
    #   2*hidden = 128 lanes for the encoder output, feedforward = 128 lanes.
    dims = {"hidden": 64, "feedforward": 128, "char_emb_size": 16,
            "case_emb_size": 8, "chars_hidden": 16, "pos_emb_size": 8}
    B, S, C = 4, 8, 6
    words_emb = 48
    word_vocab, char_vocab, case_vocab, pos_vocab, ner_vocab = 64, 32, 4, 12, 16

    key = jax.random.PRNGKey(0)
    k_par, k_w, k_c, k_ca, k_p = jax.random.split(key, 5)

    params = init_params(k_par, word_vocab=word_vocab, char_vocab=char_vocab,
                         case_vocab=case_vocab, pos_vocab=pos_vocab,
                         ner_vocab=ner_vocab, words_emb=words_emb, dims=dims)

    words = jax.random.randint(k_w, (B, S), 1, word_vocab, dtype=jnp.int32)
    words = words.at[1, -2:].set(0)                       # right-pad one sequence
    chars = jax.random.randint(k_c, (B, S, C), 1, char_vocab, dtype=jnp.int32)
    chars = chars.at[:, :, -1].set(0)                     # some char padding
    chars = jnp.where(words[:, :, None] > 0, chars, 0)    # padded words -> padded chars
    cases = jax.random.randint(k_ca, (B, S), 0, case_vocab, dtype=jnp.int32)
    pos = jax.random.randint(k_p, (B, S), 0, pos_vocab, dtype=jnp.int32)

    out = jax.jit(model_forward)(words, chars, cases, pos, params)
    jax.block_until_ready(out)
    assert out.shape == (B, S, ner_vocab) and out.dtype == jnp.float32
    assert bool(jnp.all(jnp.isfinite(out)))
    print("KERNEL_OK")
</pallas_src>

<mosaic_0001>
module attributes {stable_mosaic.version = 11 : i64} {
  func.func @attn_head_kernel(%arg0: i32, %arg1: memref<2x8x128xf32, #tpu.memory_space<vmem>>, %arg2: memref<2x1x8xf32, #tpu.memory_space<vmem>>, %arg3: memref<128x128xbf16, #tpu.memory_space<vmem>>, %arg4: memref<1x128xf32, #tpu.memory_space<vmem>>, %arg5: memref<128x128xbf16, #tpu.memory_space<vmem>>, %arg6: memref<1x128xf32, #tpu.memory_space<vmem>>, %arg7: memref<128x128xbf16, #tpu.memory_space<vmem>>, %arg8: memref<1x128xf32, #tpu.memory_space<vmem>>, %arg9: memref<128x128xbf16, #tpu.memory_space<vmem>>, %arg10: memref<1x128xf32, #tpu.memory_space<vmem>>, %arg11: memref<1x128xf32, #tpu.memory_space<vmem>>, %arg12: memref<1x128xf32, #tpu.memory_space<vmem>>, %arg13: memref<128x16xbf16, #tpu.memory_space<vmem>>, %arg14: memref<1x16xf32, #tpu.memory_space<vmem>>, %arg15: memref<2x8x16xf32, #tpu.memory_space<vmem>>) attributes {dimension_semantics = [#tpu.dimension_semantics<parallel>], iteration_bounds = array<i64: 2>, scalar_prefetch = 0 : i64, scratch_operands = 0 : i64, tpu.core_type = #tpu.core_type<tc>, window_params = [{transform_indices = @transform_0, window_bounds = array<i64: 2, 8, 128>}, {transform_indices = @transform_1, window_bounds = array<i64: 2, 1, 8>}, {pipeline_mode = #tpu.pipeline_mode<synchronous>, transform_indices = @transform_2, window_bounds = array<i64: 128, 128>}, {pipeline_mode = #tpu.pipeline_mode<synchronous>, transform_indices = @transform_3, window_bounds = array<i64: 1, 128>}, {pipeline_mode = #tpu.pipeline_mode<synchronous>, transform_indices = @transform_4, window_bounds = array<i64: 128, 128>}, {pipeline_mode = #tpu.pipeline_mode<synchronous>, transform_indices = @transform_5, window_bounds = array<i64: 1, 128>}, {pipeline_mode = #tpu.pipeline_mode<synchronous>, transform_indices = @transform_6, window_bounds = array<i64: 128, 128>}, {pipeline_mode = #tpu.pipeline_mode<synchronous>, transform_indices = @transform_7, window_bounds = array<i64: 1, 128>}, {pipeline_mode = #tpu.pipeline_mode<synchronous>, transform_indices = @transform_8, window_bounds = array<i64: 128, 128>}, {pipeline_mode = #tpu.pipeline_mode<synchronous>, transform_indices = @transform_9, window_bounds = array<i64: 1, 128>}, {pipeline_mode = #tpu.pipeline_mode<synchronous>, transform_indices = @transform_10, window_bounds = array<i64: 1, 128>}, {pipeline_mode = #tpu.pipeline_mode<synchronous>, transform_indices = @transform_11, window_bounds = array<i64: 1, 128>}, {pipeline_mode = #tpu.pipeline_mode<synchronous>, transform_indices = @transform_12, window_bounds = array<i64: 128, 16>}, {pipeline_mode = #tpu.pipeline_mode<synchronous>, transform_indices = @transform_13, window_bounds = array<i64: 1, 16>}, {transform_indices = @transform_14, window_bounds = array<i64: 2, 8, 16>}]} {
    %c0 = arith.constant 0 : index
    %c0_0 = arith.constant 0 : index
    %c0_1 = arith.constant 0 : index
    %0 = vector.load %arg1[%c0, %c0_0, %c0_1] : memref<2x8x128xf32, #tpu.memory_space<vmem>>, vector<2x8x128xf32>
    %1 = vector.shape_cast %0 : vector<2x8x128xf32> to vector<16x128xf32>
    %2 = arith.truncf %1 : vector<16x128xf32> to vector<16x128xbf16>
    %c0_2 = arith.constant 0 : index
    %c0_3 = arith.constant 0 : index
    %3 = vector.load %arg3[%c0_2, %c0_3] : memref<128x128xbf16, #tpu.memory_space<vmem>>, vector<128x128xbf16>
    %cst = arith.constant dense<0.000000e+00> : vector<16x128xf32>
    %4 = tpu.matmul %2, %3, %cst {dimension_numbers = #tpu.dot_dimension_numbers<[1], [0], [0], [1], [0, 0, 1, 1], [], []>} : vector<16x128xbf16>, vector<128x128xbf16>, vector<16x128xf32> -> vector<16x128xf32>
    %c0_4 = arith.constant 0 : index
    %c0_5 = arith.constant 0 : index
    %5 = vector.load %arg4[%c0_4, %c0_5] : memref<1x128xf32, #tpu.memory_space<vmem>>, vector<1x128xf32>
    %6 = vector.broadcast %5 : vector<1x128xf32> to vector<16x128xf32>
    %7 = arith.addf %4, %6 : vector<16x128xf32>
    %8 = math.tanh %7 : vector<16x128xf32>
    %9 = arith.truncf %8 : vector<16x128xf32> to vector<16x128xbf16>
    %c0_6 = arith.constant 0 : index
    %c0_7 = arith.constant 0 : index
    %10 = vector.load %arg5[%c0_6, %c0_7] : memref<128x128xbf16, #tpu.memory_space<vmem>>, vector<128x128xbf16>
    %cst_8 = arith.constant dense<0.000000e+00> : vector<16x128xf32>
    %11 = tpu.matmul %9, %10, %cst_8 {dimension_numbers = #tpu.dot_dimension_numbers<[1], [0], [0], [1], [0, 0, 1, 1], [], []>} : vector<16x128xbf16>, vector<128x128xbf16>, vector<16x128xf32> -> vector<16x128xf32>
    %c0_9 = arith.constant 0 : index
    %c0_10 = arith.constant 0 : index
    %12 = vector.load %arg6[%c0_9, %c0_10] : memref<1x128xf32, #tpu.memory_space<vmem>>, vector<1x128xf32>
    %13 = vector.broadcast %12 : vector<1x128xf32> to vector<16x128xf32>
    %14 = arith.addf %11, %13 : vector<16x128xf32>
    %c0_11 = arith.constant 0 : index
    %c0_12 = arith.constant 0 : index
    %15 = vector.load %arg7[%c0_11, %c0_12] : memref<128x128xbf16, #tpu.memory_space<vmem>>, vector<128x128xbf16>
    %cst_13 = arith.constant dense<0.000000e+00> : vector<16x128xf32>
    %16 = tpu.matmul %9, %15, %cst_13 {dimension_numbers = #tpu.dot_dimension_numbers<[1], [0], [0], [1], [0, 0, 1, 1], [], []>} : vector<16x128xbf16>, vector<128x128xbf16>, vector<16x128xf32> -> vector<16x128xf32>
    %c0_14 = arith.constant 0 : index
    %c0_15 = arith.constant 0 : index
    %17 = vector.load %arg8[%c0_14, %c0_15] : memref<1x128xf32, #tpu.memory_space<vmem>>, vector<1x128xf32>
    %18 = vector.broadcast %17 : vector<1x128xf32> to vector<16x128xf32>
    %19 = arith.addf %16, %18 : vector<16x128xf32>
    %c0_16 = arith.constant 0 : index
    %c0_17 = arith.constant 0 : index
    %20 = vector.load %arg9[%c0_16, %c0_17] : memref<128x128xbf16, #tpu.memory_space<vmem>>, vector<128x128xbf16>
    %cst_18 = arith.constant dense<0.000000e+00> : vector<16x128xf32>
    %21 = tpu.matmul %9, %20, %cst_18 {dimension_numbers = #tpu.dot_dimension_numbers<[1], [0], [0], [1], [0, 0, 1, 1], [], []>} : vector<16x128xbf16>, vector<128x128xbf16>, vector<16x128xf32> -> vector<16x128xf32>
    %c0_19 = arith.constant 0 : index
    %c0_20 = arith.constant 0 : index
    %22 = vector.load %arg10[%c0_19, %c0_20] : memref<1x128xf32, #tpu.memory_space<vmem>>, vector<1x128xf32>
    %23 = vector.broadcast %22 : vector<1x128xf32> to vector<16x128xf32>
    %24 = arith.addf %21, %23 : vector<16x128xf32>
    %25 = vector.shape_cast %14 : vector<16x128xf32> to vector<2x8x128xf32>
    %26 = arith.truncf %25 : vector<2x8x128xf32> to vector<2x8x128xbf16>
    %27 = vector.shape_cast %19 : vector<16x128xf32> to vector<2x8x128xf32>
    %28 = arith.truncf %27 : vector<2x8x128xf32> to vector<2x8x128xbf16>
    %29 = vector.shape_cast %24 : vector<16x128xf32> to vector<2x8x128xf32>
    %30 = arith.truncf %29 : vector<2x8x128xf32> to vector<2x8x128xbf16>
    "tpu.trace_start"() <{level = 10 : i32, message = "bqf,bkf->bqk"}> : () -> ()
    %cst_21 = arith.constant dense<0.000000e+00> : vector<2x8x8xf32>
    %31 = tpu.matmul %26, %28, %cst_21 {dimension_numbers = #tpu.dot_dimension_numbers<[2], [2], [1], [1], [0, 0, 0, 1, 1, 1], [0], [0]>} : vector<2x8x128xbf16>, vector<2x8x128xbf16>, vector<2x8x8xf32> -> vector<2x8x8xf32>
    "tpu.trace_stop"() : () -> ()
    %cst_22 = arith.constant 0.0883883461 : f32
    %32 = vector.broadcast %cst_22 : f32 to vector<2x8x8xf32>
    %33 = arith.mulf %31, %32 : vector<2x8x8xf32>
    %c0_23 = arith.constant 0 : index
    %c0_24 = arith.constant 0 : index
    %c0_25 = arith.constant 0 : index
    %34 = vector.load %arg2[%c0_23, %c0_24, %c0_25] : memref<2x1x8xf32, #tpu.memory_space<vmem>>, vector<2x1x8xf32>
    %cst_26 = arith.constant 0.000000e+00 : f32
    %35 = vector.broadcast %cst_26 : f32 to vector<2x1x8xf32>
    %36 = arith.cmpf ogt, %34, %35 : vector<2x1x8xf32>
    %cst_27 = arith.constant -1.000000e+10 : f32
    %37 = vector.shape_cast %36 : vector<2x1x8xi1> to vector<2x1x8xi1>
    %38 = vector.broadcast %37 : vector<2x1x8xi1> to vector<2x8x8xi1>
    %39 = vector.broadcast %cst_27 : f32 to vector<2x8x8xf32>
    %40 = arith.select %38, %33, %39 : vector<2x8x8xi1>, vector<2x8x8xf32>
    %cst_28 = arith.constant dense<0xFF800000> : vector<2x8xf32>
    %41 = vector.multi_reduction <maximumf>, %40, %cst_28 [2] : vector<2x8x8xf32> to vector<2x8xf32>
    %42 = vector.shape_cast %41 : vector<2x8xf32> to vector<2x8x1xf32>
    %43 = vector.broadcast %42 : vector<2x8x1xf32> to vector<2x8x8xf32>
    %44 = arith.subf %40, %43 : vector<2x8x8xf32>
    %45 = math.exp %44 : vector<2x8x8xf32>
    %cst_29 = arith.constant dense<0.000000e+00> : vector<2x8xf32>
    %46 = vector.multi_reduction <add>, %45, %cst_29 [2] : vector<2x8x8xf32> to vector<2x8xf32>
    %47 = vector.shape_cast %46 : vector<2x8xf32> to vector<2x8x1xf32>
    %48 = tpu.reciprocal %47 {approx = true} : vector<2x8x1xf32> -> vector<2x8x1xf32>
    %49 = vector.broadcast %48 : vector<2x8x1xf32> to vector<2x8x8xf32>
    %50 = arith.mulf %45, %49 : vector<2x8x8xf32>
    %51 = arith.truncf %50 : vector<2x8x8xf32> to vector<2x8x8xbf16>
    "tpu.trace_start"() <{level = 10 : i32, message = "bqk,bkf->bqf"}> : () -> ()
    %cst_30 = arith.constant dense<0.000000e+00> : vector<2x8x128xf32>
    %52 = tpu.matmul %51, %30, %cst_30 {dimension_numbers = #tpu.dot_dimension_numbers<[2], [1], [1], [2], [0, 0, 0, 1, 1, 2], [0], [0]>} : vector<2x8x8xbf16>, vector<2x8x128xbf16>, vector<2x8x128xf32> -> vector<2x8x128xf32>
    "tpu.trace_stop"() : () -> ()
    %cst_31 = arith.constant dense<0.000000e+00> : vector<2x8xf32>
    %53 = vector.multi_reduction <add>, %52, %cst_31 [2] : vector<2x8x128xf32> to vector<2x8xf32>
    %54 = vector.shape_cast %53 : vector<2x8xf32> to vector<2x8x1xf32>
    %cst_32 = arith.constant 1.280000e+02 : f32
    %55 = vector.broadcast %cst_32 : f32 to vector<2x8x1xf32>
    %56 = arith.divf %54, %55 : vector<2x8x1xf32>
    %57 = vector.broadcast %56 : vector<2x8x1xf32> to vector<2x8x128xf32>
    %58 = arith.subf %52, %57 : vector<2x8x128xf32>
    %59 = arith.mulf %58, %58 : vector<2x8x128xf32>
    %cst_33 = arith.constant dense<0.000000e+00> : vector<2x8xf32>
    %60 = vector.multi_reduction <add>, %59, %cst_33 [2] : vector<2x8x128xf32> to vector<2x8xf32>
    %61 = vector.shape_cast %60 : vector<2x8xf32> to vector<2x8x1xf32>
    %cst_34 = arith.constant 1.280000e+02 : f32
    %62 = vector.broadcast %cst_34 : f32 to vector<2x8x1xf32>
    %63 = arith.divf %61, %62 : vector<2x8x1xf32>
    %64 = vector.broadcast %56 : vector<2x8x1xf32> to vector<2x8x128xf32>
    %65 = arith.subf %52, %64 : vector<2x8x128xf32>
    %cst_35 = arith.constant 9.99999974E-6 : f32
    %66 = vector.broadcast %cst_35 : f32 to vector<2x8x1xf32>
    %67 = arith.addf %63, %66 : vector<2x8x1xf32>
    %68 = math.rsqrt %67 : vector<2x8x1xf32>
    %69 = vector.broadcast %68 : vector<2x8x1xf32> to vector<2x8x128xf32>
    %70 = arith.mulf %65, %69 : vector<2x8x128xf32>
    %c0_36 = arith.constant 0 : index
    %c0_37 = arith.constant 0 : index
    %71 = vector.load %arg11[%c0_36, %c0_37] : memref<1x128xf32, #tpu.memory_space<vmem>>, vector<1x128xf32>
    %72 = vector.shape_cast %71 : vector<1x128xf32> to vector<1x1x128xf32>
    %73 = vector.broadcast %72 : vector<1x1x128xf32> to vector<2x8x128xf32>
    %74 = arith.mulf %70, %73 : vector<2x8x128xf32>
    %c0_38 = arith.constant 0 : index
    %c0_39 = arith.constant 0 : index
    %75 = vector.load %arg12[%c0_38, %c0_39] : memref<1x128xf32, #tpu.memory_space<vmem>>, vector<1x128xf32>
    %76 = vector.shape_cast %75 : vector<1x128xf32> to vector<1x1x128xf32>
    %77 = vector.broadcast %76 : vector<1x1x128xf32> to vector<2x8x128xf32>
    %78 = arith.addf %74, %77 : vector<2x8x128xf32>
    %79 = vector.shape_cast %78 : vector<2x8x128xf32> to vector<16x128xf32>
    %80 = arith.truncf %79 : vector<16x128xf32> to vector<16x128xbf16>
    %c0_40 = arith.constant 0 : index
    %c0_41 = arith.constant 0 : index
    %81 = vector.load %arg13[%c0_40, %c0_41] : memref<128x16xbf16, #tpu.memory_space<vmem>>, vector<128x16xbf16>
    %cst_42 = arith.constant dense<0.000000e+00> : vector<16x16xf32>
    %82 = tpu.matmul %80, %81, %cst_42 {dimension_numbers = #tpu.dot_dimension_numbers<[1], [0], [0], [1], [0, 0, 1, 1], [], []>} : vector<16x128xbf16>, vector<128x16xbf16>, vector<16x16xf32> -> vector<16x16xf32>
    %c0_43 = arith.constant 0 : index
    %c0_44 = arith.constant 0 : index
    %83 = vector.load %arg14[%c0_43, %c0_44] : memref<1x16xf32, #tpu.memory_space<vmem>>, vector<1x16xf32>
    %84 = vector.broadcast %83 : vector<1x16xf32> to vector<16x16xf32>
    %85 = arith.addf %82, %84 : vector<16x16xf32>
    %86 = vector.shape_cast %85 : vector<16x16xf32> to vector<2x8x16xf32>
    %c0_45 = arith.constant 0 : index
    %c0_46 = arith.constant 0 : index
    %c0_47 = arith.constant 0 : index
    %87 = vector.load %arg15[%c0_45, %c0_46, %c0_47] : memref<2x8x16xf32, #tpu.memory_space<vmem>>, vector<2x8x16xf32>
    tpu.vector_store %arg15[%c0_45, %c0_46, %c0_47], %86 {strides = array<i32>} : memref<2x8x16xf32, #tpu.memory_space<vmem>>, vector<2x8x16xf32>,
    return
  }
  func.func @transform_0(%arg0: i32) -> (i32, i32, i32) {
    %c0_i32 = arith.constant 0 : i32
    %c0_i32_0 = arith.constant 0 : i32
    %c0_i32_1 = arith.constant 0 : i32
    return %arg0, %c0_i32, %c0_i32_0 : i32, i32, i32
  }
  func.func @transform_1(%arg0: i32) -> (i32, i32, i32) {
    %c0_i32 = arith.constant 0 : i32
    %c0_i32_0 = arith.constant 0 : i32
    %c0_i32_1 = arith.constant 0 : i32
    return %arg0, %c0_i32, %c0_i32_0 : i32, i32, i32
  }
  func.func @transform_2(%arg0: i32) -> (i32, i32) {
    %c0_i32 = arith.constant 0 : i32
    %c0_i32_0 = arith.constant 0 : i32
    %c0_i32_1 = arith.constant 0 : i32
    return %c0_i32, %c0_i32_0 : i32, i32
  }
  func.func @transform_3(%arg0: i32) -> (i32, i32) {
    %c0_i32 = arith.constant 0 : i32
    %c0_i32_0 = arith.constant 0 : i32
    %c0_i32_1 = arith.constant 0 : i32
    return %c0_i32, %c0_i32_0 : i32, i32
  }
  func.func @transform_4(%arg0: i32) -> (i32, i32) {
    %c0_i32 = arith.constant 0 : i32
    %c0_i32_0 = arith.constant 0 : i32
    %c0_i32_1 = arith.constant 0 : i32
    return %c0_i32, %c0_i32_0 : i32, i32
  }
  func.func @transform_5(%arg0: i32) -> (i32, i32) {
    %c0_i32 = arith.constant 0 : i32
    %c0_i32_0 = arith.constant 0 : i32
    %c0_i32_1 = arith.constant 0 : i32
    return %c0_i32, %c0_i32_0 : i32, i32
  }
  func.func @transform_6(%arg0: i32) -> (i32, i32) {
    %c0_i32 = arith.constant 0 : i32
    %c0_i32_0 = arith.constant 0 : i32
    %c0_i32_1 = arith.constant 0 : i32
    return %c0_i32, %c0_i32_0 : i32, i32
  }
  func.func @transform_7(%arg0: i32) -> (i32, i32) {
    %c0_i32 = arith.constant 0 : i32
    %c0_i32_0 = arith.constant 0 : i32
    %c0_i32_1 = arith.constant 0 : i32
    return %c0_i32, %c0_i32_0 : i32, i32
  }
  func.func @transform_8(%arg0: i32) -> (i32, i32) {
    %c0_i32 = arith.constant 0 : i32
    %c0_i32_0 = arith.constant 0 : i32
    %c0_i32_1 = arith.constant 0 : i32
    return %c0_i32, %c0_i32_0 : i32, i32
  }
  func.func @transform_9(%arg0: i32) -> (i32, i32) {
    %c0_i32 = arith.constant 0 : i32
    %c0_i32_0 = arith.constant 0 : i32
    %c0_i32_1 = arith.constant 0 : i32
    return %c0_i32, %c0_i32_0 : i32, i32
  }
  func.func @transform_10(%arg0: i32) -> (i32, i32) {
    %c0_i32 = arith.constant 0 : i32
    %c0_i32_0 = arith.constant 0 : i32
    %c0_i32_1 = arith.constant 0 : i32
    return %c0_i32, %c0_i32_0 : i32, i32
  }
  func.func @transform_11(%arg0: i32) -> (i32, i32) {
    %c0_i32 = arith.constant 0 : i32
    %c0_i32_0 = arith.constant 0 : i32
    %c0_i32_1 = arith.constant 0 : i32
    return %c0_i32, %c0_i32_0 : i32, i32
  }
  func.func @transform_12(%arg0: i32) -> (i32, i32) {
    %c0_i32 = arith.constant 0 : i32
    %c0_i32_0 = arith.constant 0 : i32
    %c0_i32_1 = arith.constant 0 : i32
    return %c0_i32, %c0_i32_0 : i32, i32
  }
  func.func @transform_13(%arg0: i32) -> (i32, i32) {
    %c0_i32 = arith.constant 0 : i32
    %c0_i32_0 = arith.constant 0 : i32
    %c0_i32_1 = arith.constant 0 : i32
    return %c0_i32, %c0_i32_0 : i32, i32
  }
  func.func @transform_14(%arg0: i32) -> (i32, i32, i32) {
    %c0_i32 = arith.constant 0 : i32
    %c0_i32_0 = arith.constant 0 : i32
    %c0_i32_1 = arith.constant 0 : i32
    return %arg0, %c0_i32, %c0_i32_0 : i32, i32, i32
  }
}

</mosaic_0001>

<bundles_post_ra>
// kernel: reverse
= control target key start
LH: loop header
LB: loop body
LE: loop exit
PB: predicated region body
PF: predicated region fallthrough
CT: control target
= control target key end

     0   :  { %v37_v1 = vld [vmem:[#allocation0 + $0x7] ss:$-1 sm:$0xff]  ;;  %v44_v2 = vlaneseq  ;;  %s106_s0 = inlined_call_operand.vmem [shape: f32[6,32], index: 0, kind: input, shape index: {}]   ;;  %s107_s1 = inlined_call_operand.vmem [shape: f32[6,32], index: 1, kind: output, shape index: {}]  }
   0x1   :  { %v31_v0 = vld [vmem:[%s106_s0] sm:$0xff]  ;;  %v38_v3 = vrot.slane %v37_v1, 2 }
   0x2   :  { %32 = vst [vmem:[#allocation0 + $0x8] sm:$0xff] %v31_v0  ;;  %v45_v4 = vshrl.u32 %v44_v2, 7 }
   0x3   :  { %39 = vst [vmem:[#allocation1] sm:$0xff] %v38_v3 }
   0x4   :  { %vm46_vm0 = vcmp.lt.s32.totalorder %v45_v4, 6 }
   0x9   :  { %v42_v5 = vld [vmem:[#allocation0 + $0xf] ss:$-1 sm:$0xff] }
   0xa   :  { %v43_v6 = vrot.slane %v42_v5, 2 }
   0xc   :  { %47 = vst.msk [vmem:[#allocation1] sm:$0xff] %vm46_vm0, %v43_v6 }
  0x13   :  { %v76_v7 = vld [vmem:[#allocation1] sm:$0xff] }
  0x14   :  { %77 = vst [vmem:[%s107_s1] sm:$0xff] %v76_v7 }

// kernel: custom-call.3
= control target key start
LH: loop header
LB: loop body
LE: loop exit
PB: predicated region body
PF: predicated region fallthrough
CT: control target
= control target key end

     0   :  { %s6_s0 = inlined_call_operand.vmem [shape: f32[32,16], index: 0, kind: output, shape index: {}]  }

// kernel: custom-call.2
= control target key start
LH: loop header
LB: loop body
LE: loop exit
PB: predicated region body
PF: predicated region fallthrough
CT: control target
= control target key end

     0   :  { %s6_s0 = inlined_call_operand.vmem [shape: bf16[32,16], index: 0, kind: output, shape index: {}]  }

// kernel: custom-call.4
= control target key start
LH: loop header
LB: loop body
LE: loop exit
PB: predicated region body
PF: predicated region fallthrough
CT: control target
= control target key end

     0   :  { %s6_s0 = inlined_call_operand.vmem [shape: f32[4,64], index: 0, kind: output, shape index: {}]  }

// kernel: reverse.1
= control target key start
LH: loop header
LB: loop body
LE: loop exit
PB: predicated region body
PF: predicated region fallthrough
CT: control target
= control target key end

     0   :  { %v2_v0 = vlaneseq  ;;  %s109_s0 = inlined_call_operand.vmem [shape: f32[8,4], index: 0, kind: input, shape index: {}]   ;;  %s110_s1 = inlined_call_operand.vmem [shape: f32[8,4], index: 1, kind: output, shape index: {}]  }
   0x2   :  { %v3_v1 = vsub.s32 7, %v2_v0 }
   0x4   :  { %4 = vset.pattern.permute.xlu0 %v3_v1 }
   0x5   :  { %v21_v2 = vld [vmem:[%s109_s0] sm:$0xf] }
   0x6   :  { %22 = vst [vmem:[#allocation1] sm:$0xf] %v21_v2 }
   0xd   :  { %v40_v3 = vld [vmem:[#allocation1] sm:$0xf] }
   0xe   :  { %41 = vst [vmem:[#allocation0] sm:$0xf] %v40_v3 }
  0x15   :  { %v42_v4 = vld [vmem:[#allocation0] sm:$0xff] }
  0x16   :  { %43 = vperm.xlu0 %4, %v42_v4  }
  0x88   :  { %v44_v5 = vpop.permute.xlu0 %43 }
  0x89   :  { %45 = vst [vmem:[#allocation2] sm:$0xff] %v44_v5 }
  0x90   :  { %v48_v6 = vld [vmem:[#allocation2] sm:$0xf] }
  0x91   :  { %51 = vst [vmem:[#allocation3] sm:$0xf] %v48_v6 }
  0x98   :  { %v68_v7 = vld [vmem:[#allocation3] sm:$0xf] }
  0x99   :  { %69 = vst [vmem:[%s110_s1] sm:$0xf] %v68_v7 }

// kernel: model_forward.1
= control target key start
LH: loop header
LB: loop body
LE: loop exit
PB: predicated region body
PF: predicated region fallthrough
CT: control target
= control target key end

     0   :  { %s1830_s0 = inlined_call_operand.vmem [shape: f32[4,8,128], index: 0, kind: input, shape index: {}]   ;;  %s1831_s1 = inlined_call_operand.vmem [shape: f32[4,1,8], index: 1, kind: input, shape index: {}]   ;;  %s1832_s2 = inlined_call_operand.vmem [shape: bf16[128,128], index: 2, kind: input, shape index: {}]   ;;  %s1833_s3 = inlined_call_operand.vmem [shape: f32[1,128], index: 3, kind: input, shape index: {}]   ;;  %s1834_s4 = inlined_call_operand.vmem [shape: bf16[128,128], index: 4, kind: input, shape index: {}]   ;;  %s1835_s5 = inlined_call_operand.vmem [shape: f32[1,128], index: 5, kind: input, shape index: {}]   ;;  %s1836_s6 = inlined_call_operand.vmem [shape: bf16[128,128], index: 6, kind: input, shape index: {}]   ;;  %s1837_s7 = inlined_call_operand.vmem [shape: f32[1,128], index: 7, kind: input, shape index: {}]   ;;  %s1838_s8 = inlined_call_operand.vmem [shape: bf16[128,128], index: 8, kind: input, shape index: {}]   ;;  %s1839_s9 = inlined_call_operand.vmem [shape: f32[1,128], index: 9, kind: input, shape index: {}]   ;;  %s1840_s10 = inlined_call_operand.vmem [shape: f32[1,128], index: 10, kind: input, shape index: {}]   ;;  %s1841_s11 = inlined_call_operand.vmem [shape: f32[1,128], index: 11, kind: input, shape index: {}]   ;;  %s1842_s12 = inlined_call_operand.vmem [shape: bf16[128,16], index: 12, kind: input, shape index: {}]   ;;  %s1843_s13 = inlined_call_operand.vmem [shape: f32[1,16], index: 13, kind: input, shape index: {}]   ;;  %s1844_s14 = inlined_call_operand.hbm [shape: f32[4,8,16], index: 14, kind: output, shape index: {}]  }
   0x1   :  { %1849 = sst [smem:[#allocation9_spill]] %s1830_s0 }
   0x2   :  { %19 = vsyncpa [#allocation3], 0 }
   0x3   :  { %21 = vsyncpa [#allocation3 + $0x1], 0  ;;  %s1592_s29 = smov 0   ;;  %s1594_s30 = smov 0  }
   0x4   :  { %s1596_s15 = smov 0   ;;  %s1598_s16 = smov 0  }
   0x5 LB: > { %1850 = sst [smem:[#allocation5_spill]] %s1507_s15  ;;  %s1613_s17 = sadd.s32 4294967295, %s1511_s16   ;;  %s1511_s16 = sphi %s1598_s16, %s1858_s16   ;;  %s1507_s15 = sphi %s1596_s15, %s1860_s15   ;;  %s1503_s30 = sphi %s1594_s30, %s1862_s30   ;;  %s1499_s29 = sphi %s1592_s29, %s1861_s29  }
   0x6   : > { %s1165_s18 = sadd.s32 4294967294, %s1511_s16   ;;  %s1617_s19 = sadd.s32 1, %s1511_s16  }
   0x7   : > { %1851 = sst [smem:[#allocation6_spill]] %s1617_s19  ;;  %s338_s20 = sadd.s32 1, %s1507_s15 }
   0x8   : > { %s335_s21 = ssub.s32 %s1511_s16, %s1617_s19  ;;  %p348_p0 = scmp.ne.s32.totalorder %s1507_s15, %s1503_s30 }
   0x9   : > { %p336_p1 = scmp.eq.s32.totalorder %s335_s21, 0  ;;  %p349_p2 = scmp.eq.s32.totalorder %s1613_s17, 1 }
   0xa   : > { %p354_p3 = scmp.ne.s32.totalorder %s1503_s30, %s1499_s29  ;;  %p355_p4 = scmp.eq.s32.totalorder %s1165_s18, 1 }
   0xb   : > { %s1628_s22 = scalar_select %p336_p1, %s1507_s15, %s338_s20  }
   0xc   : > { %p1630_p5 = por %p349_p2, %p348_p0  ;;  %p1634_p6 = por %p355_p4, %p354_p3 }
   0xd   : > { %1852 = sst [smem:[#allocation7_spill]] %s1628_s22  ;;  %p1168_p7 = scmp.ge.s32.totalorder %s1511_s16, 1 }
   0xe   : > { %s1854_s24 = scalar_select %p1634_p6, 1, 0 }
   0xf   : > { %p426_p8 = scmp.lt.s32.totalorder %s1511_s16, 3 }
  0x10   : > { %1855 = sst [smem:[#allocation8_spill]] %s1854_s24 }
  0x11   : > { %p427_p9 = pnand %p1168_p7, %p426_p8 }
  0x12   : > { %s1170_s25 = sshll.u32 (!%p427_p9), %s1613_s17, 1  ;;  %s1856_s0 = sld [smem:[#allocation9_spill]] (!%p427_p9) }
  0x13   : > { %430 = sbr.rel (%p427_p9) target bundleno = 1285 (0x505), region = 76  ;;  %p477_p10 = scmp.lt.s32.totalorder (!%p427_p9), %s1170_s25, 3 }
  0x14   : > { %s473_s15 = sand.u32 (!%p427_p9), 1, %s1503_s30   ;;  %s1380_s28 = sshll.u32 (!%p427_p9), %s1613_s17, 4 }
  0x15   : > { %s1090_s22 = scalar_lea.hbm (!%p427_p9), %s1844_s14, %s1380_s28  ;;  %s1469_s20 = scalar_lea.hbm (!%p427_p9), %s1844_s14, 32 }
  0x16   : > { %s1093_s21 = sshll.u32 (!%p427_p9), %s1090_s22, 4  ;;  %s1094_s21 = int_to_ptr.hbm [resolvable:$true] %s1093_s21 }
  0x17   : > { %s1463_s26 = sshra.s32 (!%p427_p9), %s1094_s21, 4  ;;  %s1464_s26 = int_to_ptr.hbm [resolvable:$true] %s1463_s26 }
  0x18   : > { %v1347_v0 = vld [vmem:[%s1832_s2 + $0x38] sm:$0xff]  ;;  %v1346_v1 = vld [vmem:[%s1832_s2 + $0x30] sm:$0xff]  ;;  %v1345_v8 = vld [vmem:[%s1832_s2 + $0x28] sm:$0xff]  ;;  %s1864_s25 = smov (!%p477_p10, %s1170_s25), 3  ;;  %vm897_vm0 = vcmask 1043456   ;;  %vm869_vm3 = vcmask 64512   ;;  %p1470_p0 = scmp.lt.s32.totalorder %s1464_s26, %s1844_s14 }
  0x19   : > { %560 = vmatpush.bf16.msra.mxu0 %v1347_v0  ;;  %v1355_v2 = vld [vmem:[%s1834_s4 + $0x38] sm:$0xff]  ;;  %v1354_v5 = vld [vmem:[%s1834_s4 + $0x30] sm:$0xff]  ;;  %v1353_v9 = vld [vmem:[%s1834_s4 + $0x28] sm:$0xff]  ;;  %s1171_s27 = sshll.u32 %s1864_s25, 3  ;;  %s485_s19 = scalar_lea.vmem %s1831_s1, %s1864_s25  ;;  %vm1075_vm13 = vcmask 130048  }
  0x1a   : > { %v1363_v3 = vld [vmem:[%s1836_s6 + $0x38] sm:$0xff]  ;;  %645 = vmatpush.bf16.msra.mxu1 %v1355_v2  ;;  %v1362_v6 = vld [vmem:[%s1836_s6 + $0x30] sm:$0xff]  ;;  %v1361_v10 = vld [vmem:[%s1836_s6 + $0x28] sm:$0xff]  ;;  %s480_s24 = scalar_lea.vmem %s1856_s0, %s1171_s27  ;;  %s1079_s25 = scalar_lea.sflag [#allocation3], %s473_s15 }
  0x1b   : > { %v1371_v4 = vld [vmem:[%s1838_s8 + $0x38] sm:$0xff]  ;;  %727 = vmatpush.bf16.msra.mxu2 %v1363_v3  ;;  %v1370_v7 = vld [vmem:[%s1838_s8 + $0x30] sm:$0xff]  ;;  %v1369_v11 = vld [vmem:[%s1838_s8 + $0x28] sm:$0xff]  ;;  %v1513_v3 = vmov 0   ;;  %s1465_s0 = scalar_lea.hbm %s1464_s26, 16 }
  0x1c   : > { %809 = vmatpush.bf16.msra.mxu3 %v1371_v4  ;;  %v1344_v12 = vld [vmem:[%s1832_s2 + $0x20] sm:$0xff]  ;;  %v1343_v13 = vld [vmem:[%s1832_s2 + $0x18] sm:$0xff]  ;;  %v1342_v14 = vld [vmem:[%s1832_s2 + $0x10] sm:$0xff]  ;;  %p1466_p11 = scmp.ne.s32.totalorder %s1464_s26, %s1465_s0  ;;  %p1471_p1 = scmp.lt.s32.totalorder %s1469_s20, %s1465_s0 }
  0x1d   : > { %561 = vmatpush.bf16.msra.mxu0 %v1346_v1  ;;  %v1341_v15 = vld [vmem:[%s1832_s2 + $0x8] sm:$0xff]  ;;  %v1340_v16 = vld [vmem:[%s1832_s2] sm:$0xff]  ;;  %v1351_v23 = vld [vmem:[%s1834_s4 + $0x18] sm:$0xff] }
  0x1e   : > { %646 = vmatpush.bf16.msra.mxu1 %v1354_v5  ;;  %v489_v17 = vld [vmem:[%s480_s24] sm:$0xff]  ;;  %v490_v18 = vld [vmem:[%s480_s24 + $0x8] sm:$0xff]  ;;  %v1359_v24 = vld [vmem:[%s1836_s6 + $0x18] sm:$0xff]  ;;  %p1467_p12 = pnand %p1466_p11, %p1630_p5  ;;  %p1472_p2 = por %p1471_p1, %p1470_p0 }
  0x1f   : > { %728 = vmatpush.bf16.msra.mxu2 %v1362_v6  ;;  %v491_v19 = vpack.c.bf16 %v490_v18, %v489_v17  ;;  %v1352_v20 = vld [vmem:[%s1834_s4 + $0x20] sm:$0xff]  ;;  %v1367_v25 = vld [vmem:[%s1838_s8 + $0x18] sm:$0xff]  ;;  %v1350_v26 = vld [vmem:[%s1834_s4 + $0x10] sm:$0xff] }
  0x20   : > { %810 = vmatpush.bf16.msra.mxu3 %v1370_v7  ;;  %v1360_v21 = vld [vmem:[%s1836_s6 + $0x20] sm:$0xff]  ;;  %v1358_v27 = vld [vmem:[%s1836_s6 + $0x10] sm:$0xff]  ;;  %v1349_v29 = vld [vmem:[%s1834_s4 + $0x8] sm:$0xff]  ;;  %p1468_p13 = pneg %p1467_p12 }
  0x21   : > { %562 = vmatpush.bf16.msra.mxu0 %v1345_v8  ;;  %v1368_v22 = vld [vmem:[%s1838_s8 + $0x20] sm:$0xff]  ;;  %v1366_v28 = vld [vmem:[%s1838_s8 + $0x10] sm:$0xff]  ;;  %v1357_v30 = vld [vmem:[%s1836_s6 + $0x8] sm:$0xff] }
  0x22   : > { %647 = vmatpush.bf16.msra.mxu1 %v1353_v9  ;;  %v1365_v31 = vld [vmem:[%s1838_s8 + $0x8] sm:$0xff]  ;;  %v1348_v32 = vld [vmem:[%s1834_s4] sm:$0xff]  ;;  %p1473_p3 = pnand %p1472_p2, %p1468_p13 }
  0x23   : > { %729 = vmatpush.bf16.msra.mxu2 %v1361_v10  ;;  %v1356_v33 = vld [vmem:[%s1836_s6] sm:$0xff] }
  0x24   : > { %811 = vmatpush.bf16.msra.mxu3 %v1369_v11  ;;  %v1364_v34 = vld [vmem:[%s1838_s8] sm:$0xff] }
  0x25   : > { %563 = vmatpush.bf16.msra.mxu0 %v1344_v12  ;;  %v1424_v36 = vld [vmem:[%s1833_s3] ss:$0 sm:$0xff]  ;;  %v858_v9 = vld [vmem:[%s485_s19 + $0x1] sm:$0x1] }
  0x26   : > { %648 = vmatpush.bf16.msra.mxu1 %v1352_v20  ;;  %v1426_v43 = vld [vmem:[%s1837_s7] ss:$0 sm:$0xff]  ;;  %vm860_vm4 = vcmp.gt.f32.partialorder %v858_v9, 0.0 }
  0x27   : > { %730 = vmatpush.bf16.msra.mxu2 %v1360_v21  ;;  %v1427_v44 = vld [vmem:[%s1839_s9] ss:$0 sm:$0xff]  ;;  %v862_v12 = vsel %vm860_vm4, 1, %v1513_v3 }
  0x28   : > { %812 = vmatpush.bf16.msra.mxu3 %v1368_v22  ;;  %v1425_v48 = vld [vmem:[%s1835_s5] ss:$0 sm:$0xff] }
  0x29   : > { %564 = vmatpush.bf16.msra.mxu0 %v1343_v13  ;;  %v857_v2 = vld [vmem:[%s485_s19] sm:$0x1]  ;;  %v864_v13 = vperm.slane %v862_v12, 0  ;;  %s1169_s19 = sshll.u32 %s473_s15, 4 }
  0x2a   : > { %649 = vmatpush.bf16.msra.mxu1 %v1351_v23  ;;  %vm859_vm1 = vcmp.gt.f32.partialorder %v857_v2, 0.0  ;;  %v1372_v2 = vld [vmem:[%s1842_s12] sm:$0xff]  ;;  %s475_s18 = scalar_lea.vmem [#allocation2], %s1169_s19 }
  0x2b   : > { %731 = vmatpush.bf16.msra.mxu2 %v1359_v24  ;;  %v861_v4 = vsel %vm859_vm1, 1, %v1513_v3  ;;  %vm866_vm5 = vcmp.eq.s32.totalorder %v864_v13, 1  ;;  %s1091_s24 = sshll.u32 %s475_s18, 4  ;;  %s1092_s24 = int_to_ptr.vmem [resolvable:$true] %s1091_s24 }
  0x2c   : > { %813 = vmatpush.bf16.msra.mxu3 %v1367_v25  ;;  %v863_v5 = vperm.slane %v861_v4, 0 }
  0x2d   : > { %565 = vmatpush.bf16.msra.mxu0 %v1342_v14 }
  0x2e   : > { %650 = vmatpush.bf16.msra.mxu1 %v1350_v26  ;;  %vm865_vm2 = vcmp.eq.s32.totalorder %v863_v5, 1 }
  0x2f   : > { %732 = vmatpush.bf16.msra.mxu2 %v1358_v27 }
  0x30   : > { %814 = vmatpush.bf16.msra.mxu3 %v1366_v28 }
  0x31   : > { %566 = vmatpush.bf16.msra.mxu0 %v1341_v15 }
  0x32   : > { %651 = vmatpush.bf16.msra.mxu1 %v1349_v29 }
  0x33   : > { %733 = vmatpush.bf16.msra.mxu2 %v1357_v30 }
  0x34   : > { %815 = vmatpush.bf16.msra.mxu3 %v1365_v31 }
  0x35   : > { %567 = vmatpush.bf16.msra.mxu0 %v1340_v16 }
  0x36   : > { %652 = vmatpush.bf16.msra.mxu1 %v1348_v32 }
  0x37   : > { %734 = vmatpush.bf16.msra.mxu2 %v1356_v33 }
  0x38   : > { %568 = vmatmul.bf16.vlgmr.msra.gmra.mxu0 %v491_v19  ;;  %816 = vmatpush.bf16.msra.mxu3 %v1364_v34 }
  0xb5   : > { %v569_v35 = vpop.f32.mrf.mxu0 }
  0xb6   : > { %v570_v37 = vadd.f32 %v1424_v36, %v569_v35 }
  0xb8   : > { %1431 = vtanh.f32 %v570_v37 }
  0xbd   : > { %v571_v38 = vpop.f32.mrf.mxu0 }
  0xbe   : > { %v572_v39 = vadd.f32 %v1424_v36, %v571_v38  ;;  %v1432_v40 = vpop.eup %1431 }
  0xc0   : > { %1433 = vtanh.f32 %v572_v39 }
  0xc6   : > { %v1434_v41 = vpop.eup %1433 }
  0xc7   : > { %v576_v42 = vpack.c.bf16 %v1434_v41, %v1432_v40  ;;  %v1514_v41 = vmov 128.0  }
  0xc9   : > { %653 = vmatmul.bf16.vlgmr.msra.gmra.mxu1 %v576_v42  ;;  %735 = vmatmul.bf16.vlgmr.msra.gmra.mxu2 %v576_v42 }
  0xca   : > { %817 = vmatmul.bf16.vlgmr.msra.gmra.mxu3 %v576_v42 }
 0x146   : > { %v654_v50 = vpop.f32.mrf.mxu1 }
 0x147   : > { %v655_v53 = vadd.f32 %v1425_v48, %v654_v50 }
 0x149   : > { %v823_v58 = vpack.c.bf16 %v655_v53, %v655_v53 }
 0x14c   : > { %v736_v45 = vpop.f32.mrf.mxu2 }
 0x14d   : > { %v737_v46 = vadd.f32 %v1426_v43, %v736_v45  ;;  %v818_v47 = vpop.f32.mrf.mxu3 }
 0x14e   : > { %v819_v49 = vadd.f32 %v1427_v44, %v818_v47  ;;  %v656_v63 = vpop.f32.mrf.mxu1 }
 0x14f   : > { %v825_v51 = vpack.c.bf16 %v737_v46, %v737_v46  ;;  %v657_v0 = vadd.f32 %v1425_v48, %v656_v63 }
 0x150   : > { %v827_v52 = vpack.c.bf16 %v819_v49, %v819_v49 }
 0x151   : > { %836 = vmatpush.bf16.xpose.msrb.mxu1 %v825_v51  ;;  %v824_v1 = vpack.c.bf16 %v657_v0, %v657_v0  ;;  %v1374_v0 = vld [vmem:[%s1842_s12 + $0x10] sm:$0xff] }
 0x152   : > { %v899_v54 = vsel %vm897_vm0, %v827_v52, 0 }
 0x153   : > { %908 = vmatpush.bf16.msrb.mxu2 %v899_v54 }
 0x154   : > { %v738_v55 = vpop.f32.mrf.mxu2 }
 0x155   : > { %v739_v56 = vadd.f32 %v1426_v43, %v738_v55  ;;  %v820_v57 = vpop.f32.mrf.mxu3 }
 0x156   : > { %v821_v59 = vadd.f32 %v1427_v44, %v820_v57  ;;  %v1378_v57 = vld [vmem:[%s1842_s12 + $0x30] sm:$0xff] }
 0x157   : > { %v826_v60 = vpack.c.bf16 %v739_v56, %v739_v56  ;;  %v1379_v56 = vld [vmem:[%s1842_s12 + $0x38] sm:$0xff] }
 0x158   : > { %v828_v61 = vpack.c.bf16 %v821_v59, %v821_v59  ;;  %837 = vmatmul.bf16.vlgmr.msrb.gmra.mxu1 %v823_v58  ;;  %1061 = vmatpush.bf16.msrb.mxu0 %v1379_v56  ;;  %v1377_v58 = vld [vmem:[%s1842_s12 + $0x28] sm:$0xff]  ;;  %v1376_v59 = vld [vmem:[%s1842_s12 + $0x20] sm:$0xff] }
 0x159   : > { %849 = vmatpush.bf16.xpose.msra.mxu1 %v826_v60  ;;  %v1375_v60 = vld [vmem:[%s1842_s12 + $0x18] sm:$0xff] }
 0x15a   : > { %v918_v62 = vsel %vm897_vm0, %v828_v61, 0 }
 0x15b   : > { %927 = vmatpush.bf16.msrb.mxu3 %v918_v62 }
 0x15c   : > { %1062 = vmatpush.bf16.msrb.mxu0 %v1378_v57 }
 0x160   : > { %1063 = vmatpush.bf16.msrb.mxu0 %v1377_v58 }
 0x164   : > { %1064 = vmatpush.bf16.msrb.mxu0 %v1376_v59 }
 0x168   : > { %850 = vmatmul.bf16.vlgmr.msra.gmra.mxu1 %v824_v1  ;;  %1065 = vmatpush.bf16.msrb.mxu0 %v1375_v60  ;;  %v1373_v1 = vld [vmem:[%s1842_s12 + $0x8] sm:$0xff] }
 0x16c   : > { %1066 = vmatpush.bf16.msrb.mxu0 %v1374_v0 }
 0x170   : > { %1067 = vmatpush.bf16.msrb.mxu0 %v1373_v1 }
 0x174   : > { %1068 = vmatpush.bf16.msrb.mxu0 %v1372_v2 }
 0x1d5   : > { %v838_v6 = vpop.f32.mrf.mxu1 }
 0x1d6   : > { %v855_v7 = vmul.f32 0.088388346, %v838_v6 }
 0x1d8   : > { %v867_v8 = vsel %vm865_vm2, %v855_v7, -1e+10 }
 0x1d9   : > { %v870_v10 = vsel %vm869_vm3, %v867_v8, -inf }
 0x1da   : > { %871 = vmax.xlane.f32.xlu0 %v870_v10 }
 0x1dd   : > { %v840_v11 = vpop.f32.mrf.mxu1 }
 0x1e5   : > { %v851_v14 = vpop.f32.mrf.mxu1 }
 0x1e6   : > { %v856_v15 = vmul.f32 0.088388346, %v851_v14 }
 0x1e8   : > { %v868_v16 = vsel %vm866_vm5, %v856_v15, -1e+10 }
 0x1e9   : > { %v873_v17 = vsel %vm869_vm3, %v868_v16, -inf }
 0x1ea   : > { %874 = vmax.xlane.f32.xlu0 %v873_v17 }
 0x1ed   : > { %v853_v18 = vpop.f32.mrf.mxu1 }
 0x24d   : > { %v872_v19 = vpop.xlane.xlu0 %871 }
 0x24e   : > { %v876_v20 = vsub.f32 %v867_v8, %v872_v19  ;;  %v1428_v19 = vld [vmem:[%s1840_s10] ss:$0 sm:$0xff] }
 0x250   : > { %v878_v21 = vmul.f32 1.442695, %v876_v20 }
 0x252   : > { %1435 = vpow2.f32 %v878_v21 }
 0x258   : > { %v1436_v22 = vpop.eup %1435 }
 0x259   : > { %v882_v23 = vsel %vm869_vm3, %v1436_v22, 0.0 }
 0x25a   : > { %883 = vadd.xlane.f32.xlu1 %v882_v23 }
 0x25d   : > { %v875_v24 = vpop.xlane.xlu0 %874 }
 0x25e   : > { %v877_v25 = vsub.f32 %v868_v16, %v875_v24  ;;  %v1429_v24 = vld [vmem:[%s1841_s11] ss:$0 sm:$0xff] }
 0x260   : > { %v880_v26 = vmul.f32 1.442695, %v877_v25 }
 0x262   : > { %1437 = vpow2.f32 %v880_v26 }
 0x268   : > { %v1438_v27 = vpop.eup %1437 }
 0x269   : > { %v885_v28 = vsel %vm869_vm3, %v1438_v27, 0.0 }
 0x26a   : > { %886 = vadd.xlane.f32.xlu1 %v885_v28 }
 0x2cd   : > { %v884_v29 = vpop.xlane.xlu1 %883 }
 0x2ce   : > { %1439 = vrcp.f32 %v884_v29  ;;  %v1430_v29 = vld [vmem:[%s1843_s13] ss:$0 sm:$0xff] }
 0x2d4   : > { %v1440_v30 = vpop.eup %1439 }
 0x2d5   : > { %v890_v31 = vmul.f32 %v1440_v30, %v1436_v22 }
 0x2d7   : > { %v892_v32 = vpack.c.bf16 %v890_v31, %v890_v31 }
 0x2d9   : > { %1301 = vmatmul.msk.bf16.vlgmr.msrb.gmra.mxu2 %vm869_vm3, %v892_v32 }
 0x2dd   : > { %v887_v33 = vpop.xlane.xlu1 %886 }
 0x2de   : > { %1441 = vrcp.f32 %v887_v33 }
 0x2df   : > { %1443 = vrcp.f32 %v1514_v41 }
 0x2e4   : > { %v1442_v34 = vpop.eup %1441 }
 0x2e5   : > { %v891_v35 = vmul.f32 %v1442_v34, %v1438_v27  ;;  %v1444_v42 = vpop.eup %1443 }
 0x2e6   : > { %v938_v43 = vmul.f32 128.0, %v1444_v42  ;;  %vm942_vm6 = vweird.f32 %v1444_v42 }
 0x2e7   : > { %v893_v36 = vpack.c.bf16 %v891_v35, %v891_v35 }
 0x2e8   : > { %v939_v44 = vsub.f32 1.0, %v938_v43 }
 0x2e9   : > { %1302 = vmatmul.msk.bf16.vlgmr.msrb.gmra.mxu3 %vm869_vm3, %v893_v36 }
 0x2ea   : > { %v940_v45 = vmul.f32 %v1444_v42, %v939_v44 }
 0x2ec   : > { %v941_v46 = vadd.f32 %v1444_v42, %v940_v45 }
 0x2ee   : > { %v943_v47 = vsel %vm942_vm6, %v1444_v42, %v941_v46 }
 0x35c   : > { %v910_v37 = vpop.f32.mrf.mxu2 }
 0x35d   : > { %933 = vadd.xlane.f32.xlu2 %v910_v37 }
 0x364   : > { %v912_v38 = vpop.f32.mrf.mxu2 }
 0x36c   : > { %v929_v39 = vpop.f32.mrf.mxu3 }
 0x36d   : > { %935 = vadd.xlane.f32.xlu2 %v929_v39 }
 0x374   : > { %v931_v40 = vpop.f32.mrf.mxu3 }
 0x3d0   : > { %v934_v48 = vpop.xlane.xlu2 %933 }
 0x3d1   : > { %v944_v49 = vmul.f32 %v943_v47, %v934_v48 }
 0x3d3   : > { %v946_v50 = vsub.f32 %v910_v37, %v944_v49 }
 0x3d5   : > { %v948_v51 = vmul.f32 %v946_v50, %v946_v50 }
 0x3d7   : > { %950 = vadd.xlane.f32.xlu0 %v948_v51 }
 0x3e0   : > { %v936_v52 = vpop.xlane.xlu2 %935 }
 0x3e1   : > { %v945_v53 = vmul.f32 %v943_v47, %v936_v52 }
 0x3e3   : > { %v947_v54 = vsub.f32 %v929_v39, %v945_v53 }
 0x3e5   : > { %v949_v55 = vmul.f32 %v947_v54, %v947_v54 }
 0x3e7   : > { %952 = vadd.xlane.f32.xlu1 %v949_v55 }
 0x44a   : > { %v951_v61 = vpop.xlane.xlu0 %950 }
 0x44b   : > { %v954_v62 = vmul.f32 %v951_v61, %v943_v47 }
 0x44d   : > { %v956_v63 = vadd.f32 1e-05, %v954_v62 }
 0x44f   : > { %1445 = vrsqrt.f32 %v956_v63  ;;  %vm964_vm8 = vweird.f32 %v956_v63 }
 0x455   : > { %v1446_v3 = vpop.eup %1445 }
 0x456   : > { %v959_v4 = vmul.f32 %v1446_v3, %v956_v63  ;;  %vm965_vm7 = vweird.f32 %v1446_v3 }
 0x457   : > { %vm966_vm9 = vmor %vm964_vm8, %vm965_vm7 }
 0x458   : > { %v960_v5 = vmul.f32 %v1446_v3, %v959_v4 }
 0x45a   : > { %v953_v6 = vpop.xlane.xlu1 %952  ;;  %v961_v9 = vmul.f32 0.5, %v960_v5 }
 0x45b   : > { %v955_v7 = vmul.f32 %v953_v6, %v943_v47 }
 0x45c   : > { %v962_v10 = vsub.f32 1.5, %v961_v9 }
 0x45d   : > { %v957_v8 = vadd.f32 1e-05, %v955_v7 }
 0x45e   : > { %v963_v12 = vmul.f32 %v1446_v3, %v962_v10 }
 0x45f   : > { %1447 = vrsqrt.f32 %v957_v8  ;;  %vm974_vm11 = vweird.f32 %v957_v8 }
 0x460   : > { %v967_v15 = vsel %vm966_vm9, %v1446_v3, %v963_v12 }
 0x461   : > { %v978_v18 = vmul.f32 %v967_v15, %v946_v50 }
 0x463   : > { %v984_v23 = vmul.f32 %v1428_v19, %v978_v18 }
 0x465   : > { %v1448_v11 = vpop.eup %1447  ;;  %v990_v26 = vadd.f32 %v1429_v24, %v984_v23 }
 0x466   : > { %v969_v13 = vmul.f32 %v1448_v11, %v957_v8  ;;  %vm975_vm10 = vweird.f32 %v1448_v11 }
 0x467   : > { %vm976_vm12 = vmor %vm974_vm11, %vm975_vm10 }
 0x468   : > { %v970_v14 = vmul.f32 %v1448_v11, %v969_v13 }
 0x46a   : > { %v971_v16 = vmul.f32 0.5, %v970_v14 }
 0x46c   : > { %v972_v17 = vsub.f32 1.5, %v971_v16 }
 0x46e   : > { %v973_v20 = vmul.f32 %v1448_v11, %v972_v17 }
 0x470   : > { %v977_v21 = vsel %vm976_vm12, %v1448_v11, %v973_v20 }
 0x471   : > { %v979_v22 = vmul.f32 %v977_v21, %v947_v54 }
 0x473   : > { %v985_v25 = vmul.f32 %v1428_v19, %v979_v22 }
 0x475   : > { %v991_v27 = vadd.f32 %v1429_v24, %v985_v25 }
 0x477   : > { %v992_v28 = vpack.c.bf16 %v991_v27, %v990_v26 }
 0x479   : > { %1069 = vmatmul.bf16.vlgmr.msrb.gmra.mxu0 %v992_v28 }
 0x4f6   : > { %v1070_v30 = vpop.f32.mrf.mxu0 }
 0x4f7   : > { %v1071_v31 = vadd.f32 %v1430_v29, %v1070_v30 }
 0x4f9   : > { %1076 = vst.msk [vmem:[%s475_s18] sm:$0xff] %vm1075_vm13, %v1071_v31 }
 0x4fe   : > { %v1072_v32 = vpop.f32.mrf.mxu0 }
 0x4ff   : > { %v1073_v33 = vadd.f32 %v1430_v29, %v1072_v32 }
 0x501   : > { %1077 = vst.msk [vmem:[%s475_s18 + $0x8] sm:$0xff] %vm1075_vm13, %v1073_v33 }
 0x502   : > { %1476 = shalt.err (!%p1473_p3)
}
 0x503   : > { %s1515_s15 = smov 128   ;;  %s1516_s18 = smov 8  }
 0x504   : > { %1381 = dma.vmem_to_hbm [thread:$0]  (%p1630_p5), %s1092_s24, 256, %s1094_s21, %s1079_s25, %s1515_s15, %s1515_s15, %s1516_s18  }
 0x505 PF: > { %p1387_p4 = scmp.ge.s32.totalorder %s1511_s16, 2  ;;  %s1108_s17 = sand.u32 1, %s1499_s29  }
 0x506   : > { %s1109_s19 = scalar_lea.sflag [#allocation3], %s1108_s17 }
 0x507   : > { %p1384_p7 = pnand %p1387_p4, %p1634_p6 }
 0x509   : > { %p1385_p8 = pneg %p1384_p7 }
 0x50b   : > { %1494 = dma.done.wait (%p1385_p8), %s1109_s19, 256  }
 0x50c   : > { %1496 = vsyncadd (%p1385_p8), %s1109_s19, 4294967040  ;;  %s1858_s16 = sld [smem:[#allocation6_spill]]  ;;  %s1861_s29 = smov %s1503_s30 }
 0x50d   : > { %s1859_s0 = sld [smem:[#allocation5_spill]] }
 0x50e   : > { %s1860_s15 = sld [smem:[#allocation7_spill]] }
 0x512   : > { %p24_p9 = scmp.ge.s32.totalorder %s1858_s16, 4  }
 0x513   : > { %s1862_s30 = smov %s1859_s0 }
 0x514   :  { %26 = sbr.rel (!%p24_p9) target bundleno = 5 (0x5), region = 114 }
 0x519   :  { %1115 = vsyncpa [#allocation3], 1 }
 0x51a   :  { %1117 = vsyncpa [#allocation3 + $0x1], 1 }

</bundles_post_ra>
